<compile_context>
chip_gen: v7x
topology: tpu7x:2x2x1
jax: 0.10.0
libtpu: 0.0.40
codegen_flags: <defaults>
</compile_context>

<pallas_src>
import jax
import jax.numpy as jnp
from jax import lax
from jax.experimental import pallas as pl
from jax.experimental.pallas import tpu as pltpu

LANE = 128     # lane width   (last dim)
SUBLANE = 8    # sublane rows (second-to-last dim)


def _round_up(n, m):
    return ((n + m - 1) // m) * m


def linear_clamp_kernel(x_ref, w_ref, o_ref):
    # x_ref: (Bp, Kp)  w_ref: (Kp, Np)  o_ref: (Bp, Np)
    # Bias is already folded into w_ref (ones-column in x, bias row in w).
    y = lax.dot_general(
        x_ref[...], w_ref[...],
        dimension_numbers=(((1,), (0,)), ((), ())),
        preferred_element_type=jnp.float32,
        precision=lax.Precision.HIGHEST,
    )
    y = jnp.maximum(y, 0.0)    # torch.clamp_min(v1, 0)
    y = jnp.minimum(y, 30.0)   # torch.clamp_max(v2, 30)
    o_ref[...] = y.astype(o_ref.dtype)


def make_padded_weight(weight, bias):
    """Build the padded, bias-folded weight ONCE at parameter-init time.

    weight: (OUT, IN) f32 in nn.Linear layout, bias: (OUT,) f32.
    Returns w_p: (Kp, Np) f32 with w_p[:IN, :OUT] = weight.T and
    w_p[IN, :OUT] = bias; everything else zero.
    """
    OUT, IN = weight.shape
    Kp = _round_up(IN + 1, SUBLANE)   # +1 for the folded-bias row
    Np = _round_up(OUT, LANE)         # lane-dense output (unmasked stores)
    w_p = jnp.zeros((Kp, Np), jnp.float32)
    w_p = w_p.at[:IN, :OUT].set(weight.T.astype(jnp.float32))
    w_p = w_p.at[IN, :OUT].set(bias.astype(jnp.float32))
    return w_p


def _linear_clamp(x, w_p, out_features):
    """x: (B, IN) f32.  w_p: pre-padded (Kp, Np) weight with bias folded in."""
    B, IN = x.shape
    Kp, Np = w_p.shape
    Bp = _round_up(B, SUBLANE)

    # Per-call padding only touches the tiny activation: append the bias
    # ones-column, then zero-pad to (Bp, Kp).  Padded batch rows stay all-zero
    # (they pick up nothing and are sliced off below).
    ones = jnp.ones((B, 1), jnp.float32)
    x_aug = jnp.concatenate([x.astype(jnp.float32), ones], axis=1)   # (B, IN+1)
    x_p = jnp.pad(x_aug, ((0, Bp - B), (0, Kp - (IN + 1))))          # (Bp, Kp)

    out_p = pl.pallas_call(
        linear_clamp_kernel,
        out_shape=jax.ShapeDtypeStruct((Bp, Np), jnp.float32),
        in_specs=[
            pl.BlockSpec(memory_space=pltpu.MemorySpace.VMEM),
            pl.BlockSpec(memory_space=pltpu.MemorySpace.VMEM),
        ],
        out_specs=pl.BlockSpec(memory_space=pltpu.MemorySpace.VMEM),
    )(x_p, w_p)

    # Slice stays inside the same jit; downstream code could equally consume
    # the padded (Bp, Np) buffer directly.
    return out_p[:B, :out_features]


linear_clamp = jax.jit(_linear_clamp, static_argnums=(2,))


if __name__ == "__main__":
    key = jax.random.PRNGKey(0)
    k_x, k_w, k_b = jax.random.split(key, 3)

    B, IN, OUT = 8, 10, 30

    # Deterministic parameter init mirroring nn.Linear(10, 30):
    # uniform(-1/sqrt(in), 1/sqrt(in)) for weight and bias.
    bound = 1.0 / jnp.sqrt(jnp.float32(IN))
    weight = jax.random.uniform(k_w, (OUT, IN), jnp.float32, -bound, bound)
    bias = jax.random.uniform(k_b, (OUT,), jnp.float32, -bound, bound)

    # Pad / fold the parameters exactly once (init-time, not per call).
    w_p = jax.block_until_ready(make_padded_weight(weight, bias))

    x = jax.random.normal(k_x, (B, IN), jnp.float32) * 10.0  # exercise both clamps

    out = linear_clamp(x, w_p, OUT)
    out = jax.block_until_ready(out)

    # Reference in plain JAX with the same pinned matmul precision.
    ref = jnp.clip(
        jnp.dot(x, weight.T, precision=lax.Precision.HIGHEST) + bias, 0.0, 30.0
    )
    assert out.shape == (B, OUT)
    assert jnp.allclose(out, ref, atol=1e-4, rtol=1e-4)

    print("KERNEL_OK")
</pallas_src>

<mosaic_0001>
module attributes {stable_mosaic.version = 11 : i64} {
  func.func @linear_clamp_kernel(%arg0: memref<8x16xf32, #tpu.memory_space<vmem>>, %arg1: memref<16x128xf32, #tpu.memory_space<vmem>>, %arg2: memref<8x128xf32, #tpu.memory_space<vmem>>) attributes {dimension_semantics = [], scalar_prefetch = 0 : i64, scratch_operands = 0 : i64, tpu.core_type = #tpu.core_type<tc>} {
    %c0 = arith.constant 0 : index
    %c0_0 = arith.constant 0 : index
    %0 = vector.load %arg0[%c0, %c0_0] : memref<8x16xf32, #tpu.memory_space<vmem>>, vector<8x16xf32>
    %c0_1 = arith.constant 0 : index
    %c0_2 = arith.constant 0 : index
    %1 = vector.load %arg1[%c0_1, %c0_2] : memref<16x128xf32, #tpu.memory_space<vmem>>, vector<16x128xf32>
    %cst = arith.constant dense<0.000000e+00> : vector<8x128xf32>
    %2 = tpu.matmul %0, %1, %cst {dimension_numbers = #tpu.dot_dimension_numbers<[1], [0], [0], [1], [0, 0, 1, 1], [], []>, precision = #tpu.contract_precision<fp32>} : vector<8x16xf32>, vector<16x128xf32>, vector<8x128xf32> -> vector<8x128xf32>
    %cst_3 = arith.constant 0.000000e+00 : f32
    %3 = vector.broadcast %cst_3 : f32 to vector<8x128xf32>
    %4 = arith.maximumf %2, %3 : vector<8x128xf32>
    %cst_4 = arith.constant 3.000000e+01 : f32
    %5 = vector.broadcast %cst_4 : f32 to vector<8x128xf32>
    %6 = arith.minimumf %4, %5 : vector<8x128xf32>
    %c0_5 = arith.constant 0 : index
    %c0_6 = arith.constant 0 : index
    %7 = vector.load %arg2[%c0_5, %c0_6] : memref<8x128xf32, #tpu.memory_space<vmem>>, vector<8x128xf32>
    tpu.vector_store %arg2[%c0_5, %c0_6], %6 {strides = array<i32>} : memref<8x128xf32, #tpu.memory_space<vmem>>, vector<8x128xf32>,
    return
  }
}

</mosaic_0001>

<bundles_post_ra>
// kernel: _linear_clamp.1
= control target key start
LH: loop header
LB: loop body
LE: loop exit
PB: predicated region body
PF: predicated region fallthrough
CT: control target
= control target key end

     0   :  { %v610_v3 = vmov 0.0|0.0   ;;  %vm611_vm0 = vmmov 0   ;;  %v612_v6 = vmov 0.0   ;;  %vm15_vm1 = vcmask 130048   ;;  %s656_s0 = inlined_call_operand.vmem [shape: f32[8,16], index: 0, kind: input, shape index: {}]   ;;  %s657_s1 = inlined_call_operand.vmem [shape: f32[16,128], index: 1, kind: input, shape index: {}]   ;;  %s658_s2 = inlined_call_operand.hbm [shape: f32[8,128], index: 2, kind: output, shape index: {}]  }
   0x1   :  { %v13_v0 = vld [vmem:[%s657_s1] sm:$0xff]  ;;  %v14_v1 = vld [vmem:[%s657_s1 + $0x8] sm:$0xff]  ;;  %564 = vmatprep.subr.bf16.mxu0 %v610_v3  ;;  %538 = vmatprep.mubr.msk.f32.mxu0 %vm611_vm0, %v612_v6 }
   0x2   :  { %v12_v2 = vld [vmem:[%s656_s0] sm:$0xff]  ;;  %v20_v4 = vand.u32 4294901760, %v13_v0  ;;  %v23_v5 = vand.u32 4294901760, %v14_v1 }
   0x3   :  { %7 = vsyncpa [#allocation3], 0  ;;  %555 = vmatprep.subr.bf16.mxu1 %v610_v3  ;;  %v17_v7 = vsel %vm15_vm1, %v12_v2, 0  ;;  %517 = vmatprep.mubr.msk.f32.mxu1 %vm611_vm0, %v612_v6  ;;  %s613_s0 = smov [#allocation2]  }
   0x4   :  { %v556_v8 = vpack.c.bf16 %v23_v5, %v20_v4  ;;  %v98_v9 = vsub.f32 %v13_v0, %v20_v4  ;;  %v105_v10 = vsub.f32 %v14_v1, %v23_v5  ;;  %v86_v11 = vand.u32 4294901760, %v17_v7  ;;  %s487_s1 = sshll.u32 %s613_s0, 4  ;;  %s488_s1 = int_to_ptr.vmem [resolvable:$true] %s487_s1 }
   0x5   :  { %s586_s15 = scalar_lea.vmem %s488_s1, 128  ;;  %p591_p1 = scmp.lt.s32.totalorder %s488_s1, %s488_s1 }
   0x6   :  { %566 = vmatpush3.bf16.msra.mxu0 %v556_v8  ;;  %v87_v12 = vsub.f32 %v17_v7, %v86_v11  ;;  %557 = vmatpush3.bf16.msra.mxu1 %v556_v8  ;;  %v99_v13 = vand.u32 4294901760, %v98_v9  ;;  %v106_v14 = vand.u32 4294901760, %v105_v10  ;;  %v562_v24 = vpack.c.bf16 %v105_v10, %v98_v9  ;;  %p587_p0 = scmp.ne.s32.totalorder %s488_s1, %s586_s15  ;;  %p592_p2 = scmp.lt.s32.totalorder %s586_s15, %s586_s15 }
   0x7   :  { %558 = vmatprep.subr.bf16.mxu1 %v610_v3  ;;  %567 = vmatprep.subr.bf16.mxu0 %v610_v3 }
   0x8   :  { %v88_v15 = vand.u32 4294901760, %v87_v12  ;;  %v100_v16 = vsub.f32 %v98_v9, %v99_v13  ;;  %v107_v17 = vsub.f32 %v105_v10, %v106_v14  ;;  %v568_v18 = vpack.c.bf16 %v106_v14, %v99_v13  ;;  %p593_p3 = por %p592_p2, %p591_p1 }
   0xa   :  { %539 = vmatmul.mubr.f32.vlgmr.msra.gmra.mrb[0].mxu0 %v88_v15  ;;  %v89_v19 = vsub.f32 %v87_v12, %v88_v15  ;;  %v101_v20 = vand.u32 4294901760, %v100_v16  ;;  %v108_v21 = vand.u32 4294901760, %v107_v17  ;;  %p594_p4 = pnand %p593_p3, %p587_p0 }
   0xb   :  { %569 = vmatpush3.bf16.msra.mxu0 %v568_v18  ;;  %545 = vmatprep.mubr.msk.f32.mxu0 %vm611_vm0, %v612_v6 }
   0xc   :  { %v90_v22 = vand.u32 4294901760, %v89_v19  ;;  %v559_v23 = vpack.c.bf16 %v108_v21, %v101_v20  ;;  %570 = vmatprep.subr.bf16.mxu0 %v610_v3 }
   0xe   :  { %518 = vmatmul.mubr.f32.vlgmr.msra.gmra.mrb[0].mxu1 %v90_v22 }
   0xf   :  { %560 = vmatpush3.bf16.msra.mxu1 %v559_v23  ;;  %524 = vmatprep.mubr.msk.f32.mxu1 %vm611_vm0, %v612_v6 }
  0x10   :  { %561 = vmatprep.subr.bf16.mxu1 %v610_v3 }
  0x12   :  { %546 = vmatmul.mubr.f32.vlgmr.msra.gmra.mrb[0].mxu0 %v86_v11 }
  0x13   :  { %572 = vmatpush3.bf16.msra.mxu0 %v556_v8  ;;  %552 = vmatprep.mubr.msk.f32.mxu0 %vm611_vm0, %v612_v6 }
  0x16   :  { %525 = vmatmul.mubr.f32.vlgmr.msra.gmra.mrb[0].mxu1 %v86_v11 }
  0x17   :  { %563 = vmatpush3.bf16.msra.mxu1 %v562_v24  ;;  %531 = vmatprep.mubr.msk.f32.mxu1 %vm611_vm0, %v612_v6 }
  0x1a   :  { %553 = vmatmul.mubr.f32.vlgmr.msra.gmra.mrb[0].mxu0 %v86_v11 }
  0x1e   :  { %532 = vmatmul.mubr.f32.vlgmr.msra.gmra.mrb[0].mxu1 %v87_v12 }
  0xed   :  { %v474_v25 = vpop.f32.mrb[0].mxu0 }
  0xee   :  { %v554_v26 = vpop.f32.mrb[1].mxu0 }
  0xf1   :  { %v249_v27 = vpop.f32.mrb[0].mxu1 }
  0xf2   :  { %v573_v28 = vadd.f32 %v474_v25, %v249_v27  ;;  %v533_v29 = vpop.f32.mrb[1].mxu1 }
  0xf4   :  { %v478_v30 = vmax.f32 %v573_v28, 0.0 }
  0xf6   :  { %v479_v31 = vmin.f32 %v478_v30, 30.0 }
  0xf8   :  { %480 = vst [vmem:[#allocation2] sm:$0xff] %v479_v31 }
  0xf9   :  { %597 = shalt.err (!%p594_p4)
}
  0xfa   :  { %s598_s18 = scalar_lea.hbm %s658_s2, 128 }
  0xfb   :  { %p599_p5 = scmp.ne.s32.totalorder %s658_s2, %s598_s18  ;;  %p602_p6 = scmp.lt.u32.totalorder %s598_s18, %s658_s2 }
  0xfd   :  { %p604_p7 = pnand %p602_p6, %p599_p5 }
  0xff   :  { %607 = shalt.err (!%p604_p7)
}
 0x100   :  { %490 = dma.vmem_to_hbm [thread:$0]  %s488_s1, 128, %s658_s2, [#allocation3]  }
 0x101   :  { %608 = dma.done.wait [#allocation3], 128  }
 0x102   :  { %609 = vsyncadd [#allocation3], 4294967168 }
 0x103   :  { %494 = vsyncpa [#allocation3], 1 }

</bundles_post_ra>
